<compile_context>
chip_gen: v5e
topology: v5e:2x2
jax: 0.10.0
libtpu: 0.0.40
codegen_flags: <defaults>
</compile_context>

<pallas_src>
import jax
import jax.numpy as jnp
from jax.experimental import pallas as pl
from jax.experimental.pallas import tpu as pltpu

_LANE = 128
_SUBLANE = 8


def _round_up(x, m):
    return (x + m - 1) // m * m


def qnet_kernel(x_ref, w1_ref, b1_ref, w2_ref, b2_ref, q_ref):
    # x:  (TB, S)  bf16      w1: (S, H)       bf16   b1: (1, H)       f32
    # w2: (H, Apad) bf16     b2: (1, Apad)    f32    q:  (TB, Apad)   f32
    h = jnp.dot(x_ref[...], w1_ref[...], preferred_element_type=jnp.float32)
    h = jnp.maximum(h + b1_ref[...], 0.0)          # fused bias + ReLU on the VPU
    q_ref[...] = (
        jnp.dot(h.astype(w2_ref.dtype), w2_ref[...],
                preferred_element_type=jnp.float32)
        + b2_ref[...]
    )


def qnet_forward(x, w1_t, b1, w2_t, b2, *, block_b=512):
    """Fused QNet forward: relu(x @ w1_t + b1) @ w2_t + b2.

    x:    (B, S) f32            w1_t: (S, H) f32    b1: (1, H) f32
    w2_t: (H, A) f32            b2:   (1, A) f32
    Returns (B, A) f32 Q-values.
    """
    B, S = x.shape
    H = w1_t.shape[1]
    A = w2_t.shape[1]

    # Lane-dense output: pad the action dim to a full 128-lane vreg width.
    out_pad = _round_up(A, _LANE)
    w2_p = jnp.pad(w2_t, ((0, 0), (0, out_pad - A)))
    b2_p = jnp.pad(b2, ((0, 0), (0, out_pad - A)))

    # bf16 MXU operands, f32 accumulation / biases.
    xb = x.astype(jnp.bfloat16)
    w1b = w1_t.astype(jnp.bfloat16)
    w2b = w2_p.astype(jnp.bfloat16)

    # Batch tile: sublane-aligned, clamped to the (padded) batch size.
    tb = min(block_b, _round_up(B, _SUBLANE))
    tb = _round_up(tb, _SUBLANE)
    b_pad = _round_up(B, tb)
    if b_pad != B:
        xb = jnp.pad(xb, ((0, b_pad - B), (0, 0)))
    grid = (b_pad // tb,)

    flops = 2 * b_pad * S * H + 2 * b_pad * H * out_pad
    bytes_accessed = (
        xb.size * 2 + w1b.size * 2 + w2b.size * 2
        + b1.size * 4 + b2_p.size * 4 + b_pad * out_pad * 4
    )

    q_padded = pl.pallas_call(
        qnet_kernel,
        out_shape=jax.ShapeDtypeStruct((b_pad, out_pad), jnp.float32),
        grid_spec=pltpu.PrefetchScalarGridSpec(
            num_scalar_prefetch=0,
            grid=grid,
            in_specs=[
                pl.BlockSpec((tb, S), lambda i: (i, 0)),        # activation stream
                pl.BlockSpec((S, H), lambda i: (0, 0)),          # resident weights
                pl.BlockSpec((1, H), lambda i: (0, 0)),
                pl.BlockSpec((H, out_pad), lambda i: (0, 0)),
                pl.BlockSpec((1, out_pad), lambda i: (0, 0)),
            ],
            out_specs=pl.BlockSpec((tb, out_pad), lambda i: (i, 0)),
        ),
        compiler_params=pltpu.CompilerParams(
            dimension_semantics=("parallel",),   # megacore batch sharding on v7x
        ),
        cost_estimate=pl.CostEstimate(
            flops=flops, transcendentals=0, bytes_accessed=bytes_accessed
        ),
    )(xb, w1b, b1, w2b, b2_p)

    # Drop batch padding and the lane padding (padded lanes are pure zeros and
    # must never reach the downstream argmax over actions).
    return q_padded[:B, :A]


def init_qnet_params(key, state_space, num_hidden, max_trade):
    """Deterministic synthetic parameters (PyTorch-Linear-like uniform init)."""
    out_dim = max_trade * 2 + 1
    k1, k2, k3, k4 = jax.random.split(key, 4)
    lim1 = 1.0 / jnp.sqrt(jnp.float32(state_space))
    lim2 = 1.0 / jnp.sqrt(jnp.float32(num_hidden))
    # Stored pre-transposed: (in, out)
    w1_t = jax.random.uniform(k1, (state_space, num_hidden), jnp.float32, -lim1, lim1)
    b1 = jax.random.uniform(k2, (1, num_hidden), jnp.float32, -lim1, lim1)
    w2_t = jax.random.uniform(k3, (num_hidden, out_dim), jnp.float32, -lim2, lim2)
    b2 = jax.random.uniform(k4, (1, out_dim), jnp.float32, -lim2, lim2)
    return w1_t, b1, w2_t, b2


if __name__ == "__main__":
    # Shapes consistent with the module: batch=2, state_space=16,
    # num_hidden=32, max_trade=4 -> output dim = 9.
    B, state_space, num_hidden, max_trade = 2, 16, 32, 4
    out_dim = max_trade * 2 + 1

    key = jax.random.PRNGKey(0)
    k_x, k_p, k_x2 = jax.random.split(key, 3)
    x = jax.random.normal(k_x, (B, state_space), jnp.float32)
    w1_t, b1, w2_t, b2 = init_qnet_params(k_p, state_space, num_hidden, max_trade)

    # Pure-JAX reference with matching bf16-operand / f32-accumulation math.
    def ref_forward(xr):
        xb = xr.astype(jnp.bfloat16)
        w1b = w1_t.astype(jnp.bfloat16)
        w2b = w2_t.astype(jnp.bfloat16)
        h = jnp.maximum(
            jnp.dot(xb, w1b, preferred_element_type=jnp.float32) + b1, 0.0
        )
        return jnp.dot(h.astype(jnp.bfloat16), w2b,
                       preferred_element_type=jnp.float32) + b2

    # Small per-step inference shape (B=2): single grid step, padded batch tile.
    q = jax.block_until_ready(qnet_forward(x, w1_t, b1, w2_t, b2))
    assert q.shape == (B, out_dim)
    assert jnp.allclose(q, ref_forward(x), atol=1e-3, rtol=1e-3)

    # Replay-batch style call exercising the multi-tile grid + batch padding.
    B2 = 300
    x2 = jax.random.normal(k_x2, (B2, state_space), jnp.float32)
    q2 = jax.block_until_ready(qnet_forward(x2, w1_t, b1, w2_t, b2, block_b=128))
    assert q2.shape == (B2, out_dim)
    assert jnp.allclose(q2, ref_forward(x2), atol=1e-3, rtol=1e-3)

    # TODO(synk): get_action's epsilon-greedy branch uses host-side Python
    # random and .item(); it stays outside the kernel (argmax over q[:, :9]).
    print("KERNEL_OK")
</pallas_src>

<mosaic_0001>
module attributes {stable_mosaic.version = 11 : i64} {
  func.func @qnet_kernel(%arg0: i32, %arg1: memref<8x16xbf16, #tpu.memory_space<vmem>>, %arg2: memref<16x32xbf16, #tpu.memory_space<vmem>>, %arg3: memref<1x32xf32, #tpu.memory_space<vmem>>, %arg4: memref<32x128xbf16, #tpu.memory_space<vmem>>, %arg5: memref<1x128xf32, #tpu.memory_space<vmem>>, %arg6: memref<8x128xf32, #tpu.memory_space<vmem>>) attributes {dimension_semantics = [#tpu.dimension_semantics<parallel>], iteration_bounds = array<i64: 1>, scalar_prefetch = 0 : i64, scratch_operands = 0 : i64, tpu.core_type = #tpu.core_type<tc>, window_params = [{transform_indices = @transform_0, window_bounds = array<i64: 8, 16>}, {pipeline_mode = #tpu.pipeline_mode<synchronous>, transform_indices = @transform_1, window_bounds = array<i64: 16, 32>}, {pipeline_mode = #tpu.pipeline_mode<synchronous>, transform_indices = @transform_2, window_bounds = array<i64: 1, 32>}, {pipeline_mode = #tpu.pipeline_mode<synchronous>, transform_indices = @transform_3, window_bounds = array<i64: 32, 128>}, {pipeline_mode = #tpu.pipeline_mode<synchronous>, transform_indices = @transform_4, window_bounds = array<i64: 1, 128>}, {transform_indices = @transform_5, window_bounds = array<i64: 8, 128>}]} {
    %c0 = arith.constant 0 : index
    %c0_0 = arith.constant 0 : index
    %0 = vector.load %arg1[%c0, %c0_0] : memref<8x16xbf16, #tpu.memory_space<vmem>>, vector<8x16xbf16>
    %c0_1 = arith.constant 0 : index
    %c0_2 = arith.constant 0 : index
    %1 = vector.load %arg2[%c0_1, %c0_2] : memref<16x32xbf16, #tpu.memory_space<vmem>>, vector<16x32xbf16>
    %cst = arith.constant dense<0.000000e+00> : vector<8x32xf32>
    %2 = tpu.matmul %0, %1, %cst {dimension_numbers = #tpu.dot_dimension_numbers<[1], [0], [0], [1], [0, 0, 1, 1], [], []>} : vector<8x16xbf16>, vector<16x32xbf16>, vector<8x32xf32> -> vector<8x32xf32>
    %c0_3 = arith.constant 0 : index
    %c0_4 = arith.constant 0 : index
    %3 = vector.load %arg3[%c0_3, %c0_4] : memref<1x32xf32, #tpu.memory_space<vmem>>, vector<1x32xf32>
    %4 = vector.broadcast %3 : vector<1x32xf32> to vector<8x32xf32>
    %5 = arith.addf %2, %4 : vector<8x32xf32>
    %cst_5 = arith.constant 0.000000e+00 : f32
    %6 = vector.broadcast %cst_5 : f32 to vector<8x32xf32>
    %7 = arith.maximumf %5, %6 : vector<8x32xf32>
    %8 = arith.truncf %7 : vector<8x32xf32> to vector<8x32xbf16>
    %c0_6 = arith.constant 0 : index
    %c0_7 = arith.constant 0 : index
    %9 = vector.load %arg4[%c0_6, %c0_7] : memref<32x128xbf16, #tpu.memory_space<vmem>>, vector<32x128xbf16>
    %cst_8 = arith.constant dense<0.000000e+00> : vector<8x128xf32>
    %10 = tpu.matmul %8, %9, %cst_8 {dimension_numbers = #tpu.dot_dimension_numbers<[1], [0], [0], [1], [0, 0, 1, 1], [], []>} : vector<8x32xbf16>, vector<32x128xbf16>, vector<8x128xf32> -> vector<8x128xf32>
    %c0_9 = arith.constant 0 : index
    %c0_10 = arith.constant 0 : index
    %11 = vector.load %arg5[%c0_9, %c0_10] : memref<1x128xf32, #tpu.memory_space<vmem>>, vector<1x128xf32>
    %12 = vector.broadcast %11 : vector<1x128xf32> to vector<8x128xf32>
    %13 = arith.addf %10, %12 : vector<8x128xf32>
    %c0_11 = arith.constant 0 : index
    %c0_12 = arith.constant 0 : index
    %14 = vector.load %arg6[%c0_11, %c0_12] : memref<8x128xf32, #tpu.memory_space<vmem>>, vector<8x128xf32>
    tpu.vector_store %arg6[%c0_11, %c0_12], %13 {strides = array<i32>} : memref<8x128xf32, #tpu.memory_space<vmem>>, vector<8x128xf32>,
    return
  }
  func.func @transform_0(%arg0: i32) -> (i32, i32) {
    %c0_i32 = arith.constant 0 : i32
    %c0_i32_0 = arith.constant 0 : i32
    return %arg0, %c0_i32 : i32, i32
  }
  func.func @transform_1(%arg0: i32) -> (i32, i32) {
    %c0_i32 = arith.constant 0 : i32
    %c0_i32_0 = arith.constant 0 : i32
    %c0_i32_1 = arith.constant 0 : i32
    return %c0_i32, %c0_i32_0 : i32, i32
  }
  func.func @transform_2(%arg0: i32) -> (i32, i32) {
    %c0_i32 = arith.constant 0 : i32
    %c0_i32_0 = arith.constant 0 : i32
    %c0_i32_1 = arith.constant 0 : i32
    return %c0_i32, %c0_i32_0 : i32, i32
  }
  func.func @transform_3(%arg0: i32) -> (i32, i32) {
    %c0_i32 = arith.constant 0 : i32
    %c0_i32_0 = arith.constant 0 : i32
    %c0_i32_1 = arith.constant 0 : i32
    return %c0_i32, %c0_i32_0 : i32, i32
  }
  func.func @transform_4(%arg0: i32) -> (i32, i32) {
    %c0_i32 = arith.constant 0 : i32
    %c0_i32_0 = arith.constant 0 : i32
    %c0_i32_1 = arith.constant 0 : i32
    return %c0_i32, %c0_i32_0 : i32, i32
  }
  func.func @transform_5(%arg0: i32) -> (i32, i32) {
    %c0_i32 = arith.constant 0 : i32
    %c0_i32_0 = arith.constant 0 : i32
    return %arg0, %c0_i32 : i32, i32
  }
}

</mosaic_0001>

<bundles_post_ra>
// kernel: tpu_custom_call.1
= control target key start
LH: loop header
LB: loop body
LE: loop exit
PB: predicated region body
PF: predicated region fallthrough
CT: control target
= control target key end

     0   :  { %10 = vsyncpa [#allocation3], 0  ;;  %s336_s0 = inlined_call_operand.hbm [shape: bf16[8,16], index: 0, kind: input, shape index: {}]   ;;  %s337_s1 = inlined_call_operand.hbm [shape: bf16[16,32], index: 1, kind: input, shape index: {}]   ;;  %s338_s2 = inlined_call_operand.vmem [shape: f32[1,32], index: 2, kind: input, shape index: {}]   ;;  %s339_s3 = inlined_call_operand.hbm [shape: bf16[32,128], index: 3, kind: input, shape index: {}]   ;;  %s340_s4 = inlined_call_operand.vmem [shape: f32[1,128], index: 4, kind: input, shape index: {}]   ;;  %s341_s5 = inlined_call_operand.hbm [shape: f32[8,128], index: 5, kind: output, shape index: {}]  }
   0x1   :  { %11 = vsyncpa [#allocation6], 0  ;;  %s28_s20 = sshll.u32 %s337_s1, 4  ;;  %s29_s20 = int_to_ptr.hbm [resolvable:$true] %s28_s20 }
   0x2   :  { %12 = vsyncpa [#allocation4], 0  ;;  %s282_s21 = smov [#allocation5]   ;;  %s18_s25 = sshll.u32 %s336_s0, 4  ;;  %s19_s25 = int_to_ptr.hbm [resolvable:$true] %s18_s25 }
   0x3   :  { %s30_s22 = sshll.u32 %s282_s21, 4  ;;  %s283_s26 = smov 64   ;;  %s31_s22 = int_to_ptr.vmem [resolvable:$true] %s30_s22 }
   0x4   :  { %s284_s27 = smov 4   ;;  %s285_s28 = smov [#allocation2]  }
   0x5   :  { %36 = dma.hbm_to_vmem [thread:$0]  %s29_s20, 128, %s31_s22, [#allocation6], %s283_s26, %s283_s26, %s284_s27  }
   0x6   :  { %s20_s29 = sshll.u32 %s285_s28, 4  ;;  %s43_s7 = sshll.u32 %s339_s3, 4  ;;  %s21_s29 = int_to_ptr.vmem [resolvable:$true] %s20_s29  ;;  %s44_s7 = int_to_ptr.hbm [resolvable:$true] %s43_s7 }
   0x7   :  { %23 = dma.hbm_to_vmem [thread:$0]  %s19_s25, 64, %s21_s29, [#allocation3]  }
   0x8   :  { %s286_s1 = smov [#allocation7]  }
   0x9   :  { %s45_s8 = sshll.u32 %s286_s1, 4  ;;  %s46_s8 = int_to_ptr.vmem [resolvable:$true] %s45_s8 }
   0xa   :  { %51 = dma.hbm_to_vmem [thread:$0]  %s44_s7, 256, %s46_s8, [#allocation6], %s283_s26, %s283_s26, %s284_s27  }
   0xb   :  { %276 = dma.done.wait [#allocation3], 64  }
   0xc   :  { %277 = vsyncadd [#allocation3], 4294967232 }
   0xd   :  { %278 = dma.done.wait [#allocation6], 384  }
   0xe   :  { %279 = vsyncadd [#allocation6], 4294966912  ;;  %v169_v0 = vld [vmem:[#allocation5] sm:$0xff]  ;;  %v67_v1 = vld [vmem:[#allocation2] sm:$0xf]  ;;  %vm80_vm0 = vcmask 130048  }
   0xf   :  { %91 = vmatpush.bf16.msra.mxu0 %v169_v0  ;;  %v171_v2 = vld [vmem:[#allocation7 + $0x8] sm:$0xff]  ;;  %v170_v3 = vld [vmem:[#allocation7] sm:$0xff]  ;;  %v178_v4 = vld [vmem:[%s338_s2] ss:$0 sm:$0xff]  ;;  %vm119_vm1 = vcmask 261120   ;;  %s287_s11 = smov [#allocation8]  }
  0x10   :  { %129 = vmatpush.bf16.msra.mxu1 %v171_v2  ;;  %v179_v10 = vld [vmem:[%s340_s4] ss:$0 sm:$0xff]  ;;  %s142_s12 = sshll.u32 %s287_s11, 4  ;;  %s144_s15 = sshll.u32 %s341_s5, 4  ;;  %s143_s12 = int_to_ptr.vmem [resolvable:$true] %s142_s12  ;;  %s145_s15 = int_to_ptr.hbm [resolvable:$true] %s144_s15 }
  0x12   :  { %159 = vmatmul.msk.bf16.vlgmr.msra.gmra.mxu0 %vm80_vm0, %v67_v1 }
  0x14   :  { %130 = vmatpush.bf16.msra.mxu1 %v170_v3 }
  0x8f   :  { %v93_v5 = vpop.f32.mrf.mxu0 }
  0x90   :  { %v94_v6 = vadd.f32 %v178_v4, %v93_v5 }
  0x92   :  { %v97_v7 = vmax.f32 %v94_v6, 0.0 }
  0x94   :  { %v98_v8 = vpack.c.bf16 %v97_v7, %v97_v7 }
  0x96   :  { %168 = vmatmul.msk.bf16.vlgmr.msra.gmra.mxu1 %vm119_vm1, %v98_v8 }
  0x97   :  { %v95_v9 = vpop.f32.mrf.mxu0 }
 0x113   :  { %v132_v11 = vpop.f32.mrf.mxu1 }
 0x114   :  { %v133_v12 = vadd.f32 %v179_v10, %v132_v11 }
 0x116   :  { %136 = vst [vmem:[#allocation8] sm:$0xff] %v133_v12 }
 0x117   :  { %147 = dma.vmem_to_hbm [thread:$0]  %s143_s12, 128, %s145_s15, [#allocation4]  }
 0x11b   :  { %v134_v13 = vpop.f32.mrf.mxu1 }
 0x11c   :  { %280 = dma.done.wait [#allocation4], 128  }
 0x11d   :  { %281 = vsyncadd [#allocation4], 4294967168 }
 0x11e   :  { %152 = vsyncpa [#allocation3], 1 }
 0x11f   :  { %153 = vsyncpa [#allocation6], 1 }
 0x120   :  { %154 = vsyncpa [#allocation4], 1 }

</bundles_post_ra>
